<compile_context>
chip_gen: v7x
topology: tpu7x:2x2x1
jax: 0.10.0
libtpu: 0.0.40
codegen_flags: <defaults>
</compile_context>

<pallas_src>
import functools
import math

import jax
import jax.numpy as jnp
from jax import lax
from jax.experimental import pallas as pl
from jax.experimental.pallas import tpu as pltpu


# ------------------------------ Pallas kernels ------------------------------

_CN_LAST = (((1,), (1,)), ((), ()))  # contract last dim of both operands


def _mha_block_kernel(q_ref, k_ref, v_ref,
                      wq_ref, bq_ref, wk_ref, bk_ref, wv_ref, bv_ref,
                      wo_ref, bo_ref, g_ref, beta_ref,
                      o_ref, acc_ref):
    """Fused multi-head attention + residual + LayerNorm.

    grid = (batch, head); head axis is a reduction into acc_ref (f32 VMEM).
    Per grid step (b, h): project q/k/v for head h, attention, accumulate the
    head's contribution to the output projection.  On the last head: add output
    bias + residual (the query input) and apply LayerNorm.
    """
    h = pl.program_id(1)

    @pl.when(h == 0)
    def _():
        acc_ref[...] = jnp.zeros_like(acc_ref)

    x32 = q_ref[0]                                   # (Sq, D) f32 — residual
    q = x32.astype(jnp.bfloat16)
    k = k_ref[0].astype(jnp.bfloat16)
    v = v_ref[0].astype(jnp.bfloat16)

    # per-head projections (weights are bf16, (d_head, D) — last-dim contraction)
    qh = lax.dot_general(q, wq_ref[0], _CN_LAST,
                         preferred_element_type=jnp.float32) + bq_ref[0]   # (Sq, dq)
    kh = lax.dot_general(k, wk_ref[0], _CN_LAST,
                         preferred_element_type=jnp.float32) + bk_ref[0]   # (Sk, dk)
    vh = lax.dot_general(v, wv_ref[0], _CN_LAST,
                         preferred_element_type=jnp.float32) + bv_ref[0]   # (Sk, dk)

    dq = wq_ref.shape[1]
    s = lax.dot_general(qh.astype(jnp.bfloat16), kh.astype(jnp.bfloat16), _CN_LAST,
                        preferred_element_type=jnp.float32)                # (Sq, Sk)
    s = s * (1.0 / float(dq) ** 0.5)
    # TODO(synk): for long sequences convert this to a flash-style tiled online
    # softmax over Sk blocks; at these shapes the full score tile fits VMEM.
    s = s - jnp.max(s, axis=-1, keepdims=True)
    e = jnp.exp(s)
    p = e / jnp.sum(e, axis=-1, keepdims=True)

    attn = jnp.dot(p.astype(jnp.bfloat16), vh.astype(jnp.bfloat16),
                   preferred_element_type=jnp.float32)                     # (Sq, dk)

    # this head's slice of the output projection: (Sq, dk) x (D, dk) -> (Sq, D)
    acc_ref[...] += lax.dot_general(attn.astype(jnp.bfloat16), wo_ref[0], _CN_LAST,
                                    preferred_element_type=jnp.float32)

    @pl.when(h == pl.num_programs(1) - 1)
    def _():
        z = acc_ref[...] + bo_ref[...] + x32          # output bias + residual
        mean = jnp.mean(z, axis=-1, keepdims=True)
        var = jnp.mean(jnp.square(z - mean), axis=-1, keepdims=True)
        o_ref[0] = (z - mean) * lax.rsqrt(var + 1e-5) * g_ref[...] + beta_ref[...]


def _ffn_block_kernel(x_ref, w1_ref, b1_ref, w2_ref, b2_ref, g_ref, beta_ref, o_ref):
    """Fused Linear -> ReLU -> Linear -> +residual -> LayerNorm on a row tile."""
    x32 = x_ref[...]                                  # (tm, D) f32
    x = x32.astype(jnp.bfloat16)
    h = lax.dot_general(x, w1_ref[...], _CN_LAST,
                        preferred_element_type=jnp.float32) + b1_ref[...]  # (tm, H)
    h = jnp.maximum(h, 0.0)
    y = lax.dot_general(h.astype(jnp.bfloat16), w2_ref[...], _CN_LAST,
                        preferred_element_type=jnp.float32) + b2_ref[...]  # (tm, D)
    z = x32 + y
    mean = jnp.mean(z, axis=-1, keepdims=True)
    var = jnp.mean(jnp.square(z - mean), axis=-1, keepdims=True)
    o_ref[...] = (z - mean) * lax.rsqrt(var + 1e-5) * g_ref[...] + beta_ref[...]


def _head_kernel(x_ref, w_ref, b_ref, o_ref):
    """Fused final Linear + softmax over the feature dim (decoder head)."""
    y = lax.dot_general(x_ref[...].astype(jnp.bfloat16), w_ref[...], _CN_LAST,
                        preferred_element_type=jnp.float32) + b_ref[...]
    y = y - jnp.max(y, axis=-1, keepdims=True)
    e = jnp.exp(y)
    o_ref[...] = e / jnp.sum(e, axis=-1, keepdims=True)


# -------------------------- cached pallas_call builders ----------------------

def _row_tile(n):
    # Largest aligned row tile that divides n; otherwise use the full extent
    # (full-extent blocks are always legal).  Re-derive for v7x (64 MiB VMEM).
    for t in (512, 256, 128):
        if n % t == 0:
            return t
    return n


@functools.lru_cache(maxsize=None)
def _mha_block_call(B, Sq, Sk, D, Hh, dq, dk):
    return pl.pallas_call(
        _mha_block_kernel,
        out_shape=jax.ShapeDtypeStruct((B, Sq, D), jnp.float32),
        grid_spec=pltpu.PrefetchScalarGridSpec(
            num_scalar_prefetch=0,
            grid=(B, Hh),
            in_specs=[
                pl.BlockSpec((1, Sq, D), lambda b, h: (b, 0, 0)),   # query (residual)
                pl.BlockSpec((1, Sk, D), lambda b, h: (b, 0, 0)),   # key
                pl.BlockSpec((1, Sk, D), lambda b, h: (b, 0, 0)),   # value
                pl.BlockSpec((1, dq, D), lambda b, h: (h, 0, 0)),   # wq  (bf16)
                pl.BlockSpec((1, 1, dq), lambda b, h: (h, 0, 0)),   # bq
                pl.BlockSpec((1, dk, D), lambda b, h: (h, 0, 0)),   # wk  (bf16)
                pl.BlockSpec((1, 1, dk), lambda b, h: (h, 0, 0)),   # bk
                pl.BlockSpec((1, dk, D), lambda b, h: (h, 0, 0)),   # wv  (bf16)
                pl.BlockSpec((1, 1, dk), lambda b, h: (h, 0, 0)),   # bv
                pl.BlockSpec((1, D, dk), lambda b, h: (h, 0, 0)),   # wo  (bf16)
                pl.BlockSpec((1, D),     lambda b, h: (0, 0)),      # bo
                pl.BlockSpec((1, D),     lambda b, h: (0, 0)),      # ln gamma
                pl.BlockSpec((1, D),     lambda b, h: (0, 0)),      # ln beta
            ],
            out_specs=pl.BlockSpec((1, Sq, D), lambda b, h: (b, 0, 0)),
            scratch_shapes=[pltpu.VMEM((Sq, D), jnp.float32)],
        ),
        compiler_params=pltpu.CompilerParams(
            dimension_semantics=("parallel", "arbitrary")),
    )


@functools.lru_cache(maxsize=None)
def _ffn_block_call(N, D, H, tm):
    return pl.pallas_call(
        _ffn_block_kernel,
        out_shape=jax.ShapeDtypeStruct((N, D), jnp.float32),
        grid_spec=pltpu.PrefetchScalarGridSpec(
            num_scalar_prefetch=0,
            grid=(N // tm,),
            in_specs=[
                pl.BlockSpec((tm, D), lambda i: (i, 0)),
                pl.BlockSpec((H, D),  lambda i: (0, 0)),   # w1 (bf16)
                pl.BlockSpec((1, H),  lambda i: (0, 0)),   # b1
                pl.BlockSpec((D, H),  lambda i: (0, 0)),   # w2 (bf16)
                pl.BlockSpec((1, D),  lambda i: (0, 0)),   # b2
                pl.BlockSpec((1, D),  lambda i: (0, 0)),   # ln gamma
                pl.BlockSpec((1, D),  lambda i: (0, 0)),   # ln beta
            ],
            out_specs=pl.BlockSpec((tm, D), lambda i: (i, 0)),
        ),
        compiler_params=pltpu.CompilerParams(
            dimension_semantics=("parallel",)),
    )


@functools.lru_cache(maxsize=None)
def _head_call(N, D, tm):
    return pl.pallas_call(
        _head_kernel,
        out_shape=jax.ShapeDtypeStruct((N, D), jnp.float32),
        grid_spec=pltpu.PrefetchScalarGridSpec(
            num_scalar_prefetch=0,
            grid=(N // tm,),
            in_specs=[
                pl.BlockSpec((tm, D), lambda i: (i, 0)),
                pl.BlockSpec((D, D),  lambda i: (0, 0)),   # wf (bf16)
                pl.BlockSpec((1, D),  lambda i: (0, 0)),   # bf
            ],
            out_specs=pl.BlockSpec((tm, D), lambda i: (i, 0)),
        ),
        compiler_params=pltpu.CompilerParams(
            dimension_semantics=("parallel",)),
    )


# ------------------------------ forward pieces -------------------------------

def attention_block(mha_p, ln_p, query, key, value):
    B, Sq, D = query.shape
    Sk = key.shape[1]
    Hh, dq, _ = mha_p["wq"].shape
    dk = mha_p["wk"].shape[1]
    call = _mha_block_call(B, Sq, Sk, D, Hh, dq, dk)
    return call(query, key, value,
                mha_p["wq"], mha_p["bq"],
                mha_p["wk"], mha_p["bk"],
                mha_p["wv"], mha_p["bv"],
                mha_p["wo"], mha_p["bo"],
                ln_p["g"], ln_p["b"])


def ffn_block(ff_p, ln_p, x):
    B, S, D = x.shape
    H = ff_p["w1"].shape[0]
    N = B * S
    tm = _row_tile(N)
    out = _ffn_block_call(N, D, H, tm)(
        x.reshape(N, D),
        ff_p["w1"], ff_p["b1"], ff_p["w2"], ff_p["b2"],
        ln_p["g"], ln_p["b"])
    return out.reshape(B, S, D)


def head_block(p, x):
    B, S, D = x.shape
    N = B * S
    tm = _row_tile(N)
    out = _head_call(N, D, tm)(x.reshape(N, D), p["w"], p["b"])
    return out.reshape(B, S, D)


def position_encoding(seq_len, dim_feature):
    # Matches the PyTorch reference exactly: pos / 10000 ** (dim // dim_feature)
    # (floor division of the float tensors, i.e. exponent 0 for dim < dim_feature).
    pos = jnp.arange(seq_len, dtype=jnp.float32).reshape(1, -1, 1)
    dim = jnp.arange(dim_feature, dtype=jnp.float32).reshape(1, 1, -1)
    phase = pos / 10000.0 ** jnp.floor(dim / dim_feature)
    return jnp.where(dim.astype(jnp.int32) % 2 == 0, jnp.sin(phase), jnp.cos(phase))


def encoder_layer_forward(p, src):
    src = attention_block(p["mha"], p["ln1"], src, src, src)
    src = ffn_block(p["ff"], p["ln2"], src)
    return src


def decoder_layer_forward(p, tgt, memory):
    # NB: the PyTorch layer reuses the SAME attention sublayer (+ norm) for
    # both self-attention and cross-attention.
    tgt = attention_block(p["mha"], p["ln1"], tgt, tgt, tgt)
    tgt = attention_block(p["mha"], p["ln1"], tgt, memory, memory)
    tgt = ffn_block(p["ff"], p["ln2"], tgt)
    return tgt


def encoder_forward(p, src):
    _, S, D = src.shape
    src = src + position_encoding(S, D)
    for lp in p["layers"]:
        src = encoder_layer_forward(lp, src)
    return src


def decoder_forward(p, tgt, memory):
    _, S, D = tgt.shape
    tgt = tgt + position_encoding(S, D)
    for lp in p["layers"]:
        tgt = decoder_layer_forward(lp, tgt, memory)
    return head_block(p["final"], tgt)


def transformer_forward(params, src, tgt):
    memory = encoder_forward(params["encoder"], src)
    return decoder_forward(params["decoder"], tgt, memory)


# Single jitted graph: all pallas_calls live inside one XLA executable
# (no per-op dispatch / per-op jit).
transformer_forward_jit = jax.jit(transformer_forward)


# -------------------------------- param init ---------------------------------

def _uniform_linear(key, dout, din):
    k1, k2 = jax.random.split(key)
    bound = 1.0 / math.sqrt(din)
    w = jax.random.uniform(k1, (dout, din), jnp.float32, -bound, bound)
    b = jax.random.uniform(k2, (dout,), jnp.float32, -bound, bound)
    return w, b


def _init_mha(key, num_heads, dim_in, dim_q, dim_k):
    keys = jax.random.split(key, 3 * num_heads + 1)
    wq, bq, wk, bk, wv, bv = [], [], [], [], [], []
    for h in range(num_heads):
        w, b = _uniform_linear(keys[3 * h + 0], dim_q, dim_in); wq.append(w); bq.append(b)
        w, b = _uniform_linear(keys[3 * h + 1], dim_k, dim_in); wk.append(w); bk.append(b)
        w, b = _uniform_linear(keys[3 * h + 2], dim_k, dim_in); wv.append(w); bv.append(b)
    wo, bo = _uniform_linear(keys[-1], dim_in, num_heads * dim_k)   # (D, Hh*dk), (D,)
    # split the output projection per head: wo[:, h*dk:(h+1)*dk] -> (Hh, D, dk)
    wo_stacked = jnp.transpose(wo.reshape(dim_in, num_heads, dim_k), (1, 0, 2))
    return {
        "wq": jnp.stack(wq).astype(jnp.bfloat16),      # (Hh, dq, D)
        "bq": jnp.stack(bq)[:, None, :],               # (Hh, 1, dq)  f32
        "wk": jnp.stack(wk).astype(jnp.bfloat16),      # (Hh, dk, D)
        "bk": jnp.stack(bk)[:, None, :],
        "wv": jnp.stack(wv).astype(jnp.bfloat16),      # (Hh, dk, D)
        "bv": jnp.stack(bv)[:, None, :],
        "wo": wo_stacked.astype(jnp.bfloat16),         # (Hh, D, dk)
        "bo": bo[None, :],                             # (1, D)       f32
    }


def _init_layer(key, dim_feature, num_heads, dim_hidden):
    dim_q = dim_k = max(dim_feature // num_heads, 1)
    k1, k2, k3 = jax.random.split(key, 3)
    w1, b1 = _uniform_linear(k2, dim_hidden, dim_feature)
    w2, b2 = _uniform_linear(k3, dim_feature, dim_hidden)
    ln = lambda: {"g": jnp.ones((1, dim_feature), jnp.float32),
                  "b": jnp.zeros((1, dim_feature), jnp.float32)}
    return {"mha": _init_mha(k1, num_heads, dim_feature, dim_q, dim_k),
            "ln1": ln(),
            "ff": {"w1": w1.astype(jnp.bfloat16), "b1": b1[None, :],
                   "w2": w2.astype(jnp.bfloat16), "b2": b2[None, :]},
            "ln2": ln()}


def init_transformer(key, num_enc, num_dec, dim_feature, num_heads, dim_hidden):
    ke, kd, kf = jax.random.split(key, 3)
    wf, bf = _uniform_linear(kf, dim_feature, dim_feature)
    enc = {"layers": [_init_layer(k, dim_feature, num_heads, dim_hidden)
                      for k in jax.random.split(ke, num_enc)]}
    dec = {"layers": [_init_layer(k, dim_feature, num_heads, dim_hidden)
                      for k in jax.random.split(kd, num_dec)],
           "final": {"w": wf.astype(jnp.bfloat16), "b": bf[None, :]}}
    return {"encoder": enc, "decoder": dec}


# ----------------------------------- main ------------------------------------

if __name__ == "__main__":
    key = jax.random.PRNGKey(0)
    B, S_SRC, S_TGT = 2, 8, 8
    DIM_FEATURE, NUM_HEADS, DIM_HIDDEN = 32, 4, 64
    NUM_ENC, NUM_DEC = 2, 2

    kp, ks, kt = jax.random.split(key, 3)
    params = init_transformer(kp, NUM_ENC, NUM_DEC, DIM_FEATURE, NUM_HEADS, DIM_HIDDEN)

    src = jax.random.normal(ks, (B, S_SRC, DIM_FEATURE), jnp.float32)
    tgt = jax.random.normal(kt, (B, S_TGT, DIM_FEATURE), jnp.float32)

    out = transformer_forward_jit(params, src, tgt)
    jax.block_until_ready(out)
    assert out.shape == (B, S_TGT, DIM_FEATURE)
    assert bool(jnp.all(jnp.isfinite(out)))
    print("KERNEL_OK")
</pallas_src>

<mosaic_0001>
module attributes {stable_mosaic.version = 11 : i64} {
  func.func @_head_kernel(%arg0: i32, %arg1: memref<16x32xf32, #tpu.memory_space<vmem>>, %arg2: memref<32x32xbf16, #tpu.memory_space<vmem>>, %arg3: memref<1x32xf32, #tpu.memory_space<vmem>>, %arg4: memref<16x32xf32, #tpu.memory_space<vmem>>) attributes {dimension_semantics = [#tpu.dimension_semantics<parallel>], iteration_bounds = array<i64: 1>, scalar_prefetch = 0 : i64, scratch_operands = 0 : i64, tpu.core_type = #tpu.core_type<tc>, window_params = [{transform_indices = @transform_0, window_bounds = array<i64: 16, 32>}, {pipeline_mode = #tpu.pipeline_mode<synchronous>, transform_indices = @transform_1, window_bounds = array<i64: 32, 32>}, {pipeline_mode = #tpu.pipeline_mode<synchronous>, transform_indices = @transform_2, window_bounds = array<i64: 1, 32>}, {transform_indices = @transform_3, window_bounds = array<i64: 16, 32>}]} {
    %c0 = arith.constant 0 : index
    %c0_0 = arith.constant 0 : index
    %0 = vector.load %arg1[%c0, %c0_0] : memref<16x32xf32, #tpu.memory_space<vmem>>, vector<16x32xf32>
    %1 = arith.truncf %0 : vector<16x32xf32> to vector<16x32xbf16>
    %c0_1 = arith.constant 0 : index
    %c0_2 = arith.constant 0 : index
    %2 = vector.load %arg2[%c0_1, %c0_2] : memref<32x32xbf16, #tpu.memory_space<vmem>>, vector<32x32xbf16>
    %cst = arith.constant dense<0.000000e+00> : vector<16x32xf32>
    %3 = tpu.matmul %1, %2, %cst {dimension_numbers = #tpu.dot_dimension_numbers<[1], [1], [0], [0], [0, 0, 1, 0], [], []>} : vector<16x32xbf16>, vector<32x32xbf16>, vector<16x32xf32> -> vector<16x32xf32>
    %c0_3 = arith.constant 0 : index
    %c0_4 = arith.constant 0 : index
    %4 = vector.load %arg3[%c0_3, %c0_4] : memref<1x32xf32, #tpu.memory_space<vmem>>, vector<1x32xf32>
    %5 = vector.broadcast %4 : vector<1x32xf32> to vector<16x32xf32>
    %6 = arith.addf %3, %5 : vector<16x32xf32>
    %cst_5 = arith.constant dense<0xFF800000> : vector<16xf32>
    %7 = vector.multi_reduction <maximumf>, %6, %cst_5 [1] : vector<16x32xf32> to vector<16xf32>
    %8 = vector.shape_cast %7 : vector<16xf32> to vector<16x1xf32>
    %9 = vector.broadcast %8 : vector<16x1xf32> to vector<16x32xf32>
    %10 = arith.subf %6, %9 : vector<16x32xf32>
    %11 = math.exp %10 : vector<16x32xf32>
    %cst_6 = arith.constant dense<0.000000e+00> : vector<16xf32>
    %12 = vector.multi_reduction <add>, %11, %cst_6 [1] : vector<16x32xf32> to vector<16xf32>
    %13 = vector.shape_cast %12 : vector<16xf32> to vector<16x1xf32>
    %14 = vector.broadcast %13 : vector<16x1xf32> to vector<16x32xf32>
    %15 = arith.divf %11, %14 : vector<16x32xf32>
    %c0_7 = arith.constant 0 : index
    %c0_8 = arith.constant 0 : index
    %16 = vector.load %arg4[%c0_7, %c0_8] : memref<16x32xf32, #tpu.memory_space<vmem>>, vector<16x32xf32>
    tpu.vector_store %arg4[%c0_7, %c0_8], %15 {strides = array<i32>} : memref<16x32xf32, #tpu.memory_space<vmem>>, vector<16x32xf32>,
    return
  }
  func.func @transform_0(%arg0: i32) -> (i32, i32) {
    %c0_i32 = arith.constant 0 : i32
    %c0_i32_0 = arith.constant 0 : i32
    return %arg0, %c0_i32 : i32, i32
  }
  func.func @transform_1(%arg0: i32) -> (i32, i32) {
    %c0_i32 = arith.constant 0 : i32
    %c0_i32_0 = arith.constant 0 : i32
    %c0_i32_1 = arith.constant 0 : i32
    return %c0_i32, %c0_i32_0 : i32, i32
  }
  func.func @transform_2(%arg0: i32) -> (i32, i32) {
    %c0_i32 = arith.constant 0 : i32
    %c0_i32_0 = arith.constant 0 : i32
    %c0_i32_1 = arith.constant 0 : i32
    return %c0_i32, %c0_i32_0 : i32, i32
  }
  func.func @transform_3(%arg0: i32) -> (i32, i32) {
    %c0_i32 = arith.constant 0 : i32
    %c0_i32_0 = arith.constant 0 : i32
    return %arg0, %c0_i32 : i32, i32
  }
}

module attributes {stable_mosaic.version = 11 : i64} {
  func.func @_ffn_block_kernel(%arg0: i32, %arg1: memref<16x32xf32, #tpu.memory_space<vmem>>, %arg2: memref<64x32xbf16, #tpu.memory_space<vmem>>, %arg3: memref<1x64xf32, #tpu.memory_space<vmem>>, %arg4: memref<32x64xbf16, #tpu.memory_space<vmem>>, %arg5: memref<1x32xf32, #tpu.memory_space<vmem>>, %arg6: memref<1x32xf32, #tpu.memory_space<vmem>>, %arg7: memref<1x32xf32, #tpu.memory_space<vmem>>, %arg8: memref<16x32xf32, #tpu.memory_space<vmem>>) attributes {dimension_semantics = [#tpu.dimension_semantics<parallel>], iteration_bounds = array<i64: 1>, scalar_prefetch = 0 : i64, scratch_operands = 0 : i64, tpu.core_type = #tpu.core_type<tc>, window_params = [{transform_indices = @transform_0, window_bounds = array<i64: 16, 32>}, {pipeline_mode = #tpu.pipeline_mode<synchronous>, transform_indices = @transform_1, window_bounds = array<i64: 64, 32>}, {pipeline_mode = #tpu.pipeline_mode<synchronous>, transform_indices = @transform_2, window_bounds = array<i64: 1, 64>}, {pipeline_mode = #tpu.pipeline_mode<synchronous>, transform_indices = @transform_3, window_bounds = array<i64: 32, 64>}, {pipeline_mode = #tpu.pipeline_mode<synchronous>, transform_indices = @transform_4, window_bounds = array<i64: 1, 32>}, {pipeline_mode = #tpu.pipeline_mode<synchronous>, transform_indices = @transform_5, window_bounds = array<i64: 1, 32>}, {pipeline_mode = #tpu.pipeline_mode<synchronous>, transform_indices = @transform_6, window_bounds = array<i64: 1, 32>}, {transform_indices = @transform_7, window_bounds = array<i64: 16, 32>}]} {
    %c0 = arith.constant 0 : index
    %c0_0 = arith.constant 0 : index
    %0 = vector.load %arg1[%c0, %c0_0] : memref<16x32xf32, #tpu.memory_space<vmem>>, vector<16x32xf32>
    %1 = arith.truncf %0 : vector<16x32xf32> to vector<16x32xbf16>
    %c0_1 = arith.constant 0 : index
    %c0_2 = arith.constant 0 : index
    %2 = vector.load %arg2[%c0_1, %c0_2] : memref<64x32xbf16, #tpu.memory_space<vmem>>, vector<64x32xbf16>
    %cst = arith.constant dense<0.000000e+00> : vector<16x64xf32>
    %3 = tpu.matmul %1, %2, %cst {dimension_numbers = #tpu.dot_dimension_numbers<[1], [1], [0], [0], [0, 0, 1, 0], [], []>} : vector<16x32xbf16>, vector<64x32xbf16>, vector<16x64xf32> -> vector<16x64xf32>
    %c0_3 = arith.constant 0 : index
    %c0_4 = arith.constant 0 : index
    %4 = vector.load %arg3[%c0_3, %c0_4] : memref<1x64xf32, #tpu.memory_space<vmem>>, vector<1x64xf32>
    %5 = vector.broadcast %4 : vector<1x64xf32> to vector<16x64xf32>
    %6 = arith.addf %3, %5 : vector<16x64xf32>
    %cst_5 = arith.constant 0.000000e+00 : f32
    %7 = vector.broadcast %cst_5 : f32 to vector<16x64xf32>
    %8 = arith.maximumf %6, %7 : vector<16x64xf32>
    %9 = arith.truncf %8 : vector<16x64xf32> to vector<16x64xbf16>
    %c0_6 = arith.constant 0 : index
    %c0_7 = arith.constant 0 : index
    %10 = vector.load %arg4[%c0_6, %c0_7] : memref<32x64xbf16, #tpu.memory_space<vmem>>, vector<32x64xbf16>
    %cst_8 = arith.constant dense<0.000000e+00> : vector<16x32xf32>
    %11 = tpu.matmul %9, %10, %cst_8 {dimension_numbers = #tpu.dot_dimension_numbers<[1], [1], [0], [0], [0, 0, 1, 0], [], []>} : vector<16x64xbf16>, vector<32x64xbf16>, vector<16x32xf32> -> vector<16x32xf32>
    %c0_9 = arith.constant 0 : index
    %c0_10 = arith.constant 0 : index
    %12 = vector.load %arg5[%c0_9, %c0_10] : memref<1x32xf32, #tpu.memory_space<vmem>>, vector<1x32xf32>
    %13 = vector.broadcast %12 : vector<1x32xf32> to vector<16x32xf32>
    %14 = arith.addf %11, %13 : vector<16x32xf32>
    %15 = arith.addf %0, %14 : vector<16x32xf32>
    %cst_11 = arith.constant dense<0.000000e+00> : vector<16xf32>
    %16 = vector.multi_reduction <add>, %15, %cst_11 [1] : vector<16x32xf32> to vector<16xf32>
    %17 = vector.shape_cast %16 : vector<16xf32> to vector<16x1xf32>
    %cst_12 = arith.constant 3.200000e+01 : f32
    %18 = vector.broadcast %cst_12 : f32 to vector<16x1xf32>
    %19 = arith.divf %17, %18 : vector<16x1xf32>
    %20 = vector.broadcast %19 : vector<16x1xf32> to vector<16x32xf32>
    %21 = arith.subf %15, %20 : vector<16x32xf32>
    %22 = arith.mulf %21, %21 : vector<16x32xf32>
    %cst_13 = arith.constant dense<0.000000e+00> : vector<16xf32>
    %23 = vector.multi_reduction <add>, %22, %cst_13 [1] : vector<16x32xf32> to vector<16xf32>
    %24 = vector.shape_cast %23 : vector<16xf32> to vector<16x1xf32>
    %cst_14 = arith.constant 3.200000e+01 : f32
    %25 = vector.broadcast %cst_14 : f32 to vector<16x1xf32>
    %26 = arith.divf %24, %25 : vector<16x1xf32>
    %27 = vector.broadcast %19 : vector<16x1xf32> to vector<16x32xf32>
    %28 = arith.subf %15, %27 : vector<16x32xf32>
    %cst_15 = arith.constant 9.99999974E-6 : f32
    %29 = vector.broadcast %cst_15 : f32 to vector<16x1xf32>
    %30 = arith.addf %26, %29 : vector<16x1xf32>
    %31 = math.rsqrt %30 : vector<16x1xf32>
    %32 = vector.broadcast %31 : vector<16x1xf32> to vector<16x32xf32>
    %33 = arith.mulf %28, %32 : vector<16x32xf32>
    %c0_16 = arith.constant 0 : index
    %c0_17 = arith.constant 0 : index
    %34 = vector.load %arg6[%c0_16, %c0_17] : memref<1x32xf32, #tpu.memory_space<vmem>>, vector<1x32xf32>
    %35 = vector.broadcast %34 : vector<1x32xf32> to vector<16x32xf32>
    %36 = arith.mulf %33, %35 : vector<16x32xf32>
    %c0_18 = arith.constant 0 : index
    %c0_19 = arith.constant 0 : index
    %37 = vector.load %arg7[%c0_18, %c0_19] : memref<1x32xf32, #tpu.memory_space<vmem>>, vector<1x32xf32>
    %38 = vector.broadcast %37 : vector<1x32xf32> to vector<16x32xf32>
    %39 = arith.addf %36, %38 : vector<16x32xf32>
    %c0_20 = arith.constant 0 : index
    %c0_21 = arith.constant 0 : index
    %40 = vector.load %arg8[%c0_20, %c0_21] : memref<16x32xf32, #tpu.memory_space<vmem>>, vector<16x32xf32>
    tpu.vector_store %arg8[%c0_20, %c0_21], %39 {strides = array<i32>} : memref<16x32xf32, #tpu.memory_space<vmem>>, vector<16x32xf32>,
    return
  }
  func.func @transform_0(%arg0: i32) -> (i32, i32) {
    %c0_i32 = arith.constant 0 : i32
    %c0_i32_0 = arith.constant 0 : i32
    return %arg0, %c0_i32 : i32, i32
  }
  func.func @transform_1(%arg0: i32) -> (i32, i32) {
    %c0_i32 = arith.constant 0 : i32
    %c0_i32_0 = arith.constant 0 : i32
    %c0_i32_1 = arith.constant 0 : i32
    return %c0_i32, %c0_i32_0 : i32, i32
  }
  func.func @transform_2(%arg0: i32) -> (i32, i32) {
    %c0_i32 = arith.constant 0 : i32
    %c0_i32_0 = arith.constant 0 : i32
    %c0_i32_1 = arith.constant 0 : i32
    return %c0_i32, %c0_i32_0 : i32, i32
  }
  func.func @transform_3(%arg0: i32) -> (i32, i32) {
    %c0_i32 = arith.constant 0 : i32
    %c0_i32_0 = arith.constant 0 : i32
    %c0_i32_1 = arith.constant 0 : i32
    return %c0_i32, %c0_i32_0 : i32, i32
  }
  func.func @transform_4(%arg0: i32) -> (i32, i32) {
    %c0_i32 = arith.constant 0 : i32
    %c0_i32_0 = arith.constant 0 : i32
    %c0_i32_1 = arith.constant 0 : i32
    return %c0_i32, %c0_i32_0 : i32, i32
  }
  func.func @transform_5(%arg0: i32) -> (i32, i32) {
    %c0_i32 = arith.constant 0 : i32
    %c0_i32_0 = arith.constant 0 : i32
    %c0_i32_1 = arith.constant 0 : i32
    return %c0_i32, %c0_i32_0 : i32, i32
  }
  func.func @transform_6(%arg0: i32) -> (i32, i32) {
    %c0_i32 = arith.constant 0 : i32
    %c0_i32_0 = arith.constant 0 : i32
    %c0_i32_1 = arith.constant 0 : i32
    return %c0_i32, %c0_i32_0 : i32, i32
  }
  func.func @transform_7(%arg0: i32) -> (i32, i32) {
    %c0_i32 = arith.constant 0 : i32
    %c0_i32_0 = arith.constant 0 : i32
    return %arg0, %c0_i32 : i32, i32
  }
}

module attributes {stable_mosaic.version = 11 : i64} {
  func.func @_mha_block_kernel(%arg0: i32, %arg1: i32, %arg2: memref<1x8x32xf32, #tpu.memory_space<vmem>>, %arg3: memref<1x8x32xf32, #tpu.memory_space<vmem>>, %arg4: memref<1x8x32xf32, #tpu.memory_space<vmem>>, %arg5: memref<1x8x32xbf16, #tpu.memory_space<vmem>>, %arg6: memref<1x1x8xf32, #tpu.memory_space<vmem>>, %arg7: memref<1x8x32xbf16, #tpu.memory_space<vmem>>, %arg8: memref<1x1x8xf32, #tpu.memory_space<vmem>>, %arg9: memref<1x8x32xbf16, #tpu.memory_space<vmem>>, %arg10: memref<1x1x8xf32, #tpu.memory_space<vmem>>, %arg11: memref<1x32x8xbf16, #tpu.memory_space<vmem>>, %arg12: memref<1x32xf32, #tpu.memory_space<vmem>>, %arg13: memref<1x32xf32, #tpu.memory_space<vmem>>, %arg14: memref<1x32xf32, #tpu.memory_space<vmem>>, %arg15: memref<1x8x32xf32, #tpu.memory_space<vmem>>, %arg16: memref<8x32xf32, #tpu.memory_space<vmem>>) attributes {dimension_semantics = [#tpu.dimension_semantics<parallel>, #tpu.dimension_semantics<arbitrary>], iteration_bounds = array<i64: 2, 4>, scalar_prefetch = 0 : i64, scratch_operands = 1 : i64, tpu.core_type = #tpu.core_type<tc>, window_params = [{transform_indices = @transform_0, window_bounds = array<i64: 1, 8, 32>}, {transform_indices = @transform_1, window_bounds = array<i64: 1, 8, 32>}, {transform_indices = @transform_2, window_bounds = array<i64: 1, 8, 32>}, {transform_indices = @transform_3, window_bounds = array<i64: 1, 8, 32>}, {transform_indices = @transform_4, window_bounds = array<i64: 1, 1, 8>}, {transform_indices = @transform_5, window_bounds = array<i64: 1, 8, 32>}, {transform_indices = @transform_6, window_bounds = array<i64: 1, 1, 8>}, {transform_indices = @transform_7, window_bounds = array<i64: 1, 8, 32>}, {transform_indices = @transform_8, window_bounds = array<i64: 1, 1, 8>}, {transform_indices = @transform_9, window_bounds = array<i64: 1, 32, 8>}, {pipeline_mode = #tpu.pipeline_mode<synchronous>, transform_indices = @transform_10, window_bounds = array<i64: 1, 32>}, {pipeline_mode = #tpu.pipeline_mode<synchronous>, transform_indices = @transform_11, window_bounds = array<i64: 1, 32>}, {pipeline_mode = #tpu.pipeline_mode<synchronous>, transform_indices = @transform_12, window_bounds = array<i64: 1, 32>}, {transform_indices = @transform_13, window_bounds = array<i64: 1, 8, 32>}]} {
    %c0_i32 = arith.constant 0 : i32
    %0 = arith.cmpi eq, %arg1, %c0_i32 : i32
    %1 = arith.extui %0 : i1 to i32
    %c0_i32_0 = arith.constant 0 : i32
    %2 = arith.cmpi ne, %1, %c0_i32_0 : i32
    scf.if %2 {
      %cst_43 = arith.constant 0.000000e+00 : f32
      %60 = vector.broadcast %cst_43 : f32 to vector<8x32xf32>
      %c0_44 = arith.constant 0 : index
      %c0_45 = arith.constant 0 : index
      %61 = vector.load %arg16[%c0_44, %c0_45] : memref<8x32xf32, #tpu.memory_space<vmem>>, vector<8x32xf32>
      tpu.vector_store %arg16[%c0_44, %c0_45], %60 {strides = array<i32>} : memref<8x32xf32, #tpu.memory_space<vmem>>, vector<8x32xf32>,
    } else {
    }
    %c0 = arith.constant 0 : index
    %c0_1 = arith.constant 0 : index
    %c0_2 = arith.constant 0 : index
    %3 = vector.load %arg2[%c0, %c0_1, %c0_2] : memref<1x8x32xf32, #tpu.memory_space<vmem>>, vector<1x8x32xf32>
    %4 = vector.shape_cast %3 : vector<1x8x32xf32> to vector<8x32xf32>
    %5 = arith.truncf %4 : vector<8x32xf32> to vector<8x32xbf16>
    %c0_3 = arith.constant 0 : index
    %c0_4 = arith.constant 0 : index
    %c0_5 = arith.constant 0 : index
    %6 = vector.load %arg3[%c0_3, %c0_4, %c0_5] : memref<1x8x32xf32, #tpu.memory_space<vmem>>, vector<1x8x32xf32>
    %7 = vector.shape_cast %6 : vector<1x8x32xf32> to vector<8x32xf32>
    %8 = arith.truncf %7 : vector<8x32xf32> to vector<8x32xbf16>
    %c0_6 = arith.constant 0 : index
    %c0_7 = arith.constant 0 : index
    %c0_8 = arith.constant 0 : index
    %9 = vector.load %arg4[%c0_6, %c0_7, %c0_8] : memref<1x8x32xf32, #tpu.memory_space<vmem>>, vector<1x8x32xf32>
    %10 = vector.shape_cast %9 : vector<1x8x32xf32> to vector<8x32xf32>
    %11 = arith.truncf %10 : vector<8x32xf32> to vector<8x32xbf16>
    %c0_9 = arith.constant 0 : index
    %c0_10 = arith.constant 0 : index
    %c0_11 = arith.constant 0 : index
    %12 = vector.load %arg5[%c0_9, %c0_10, %c0_11] : memref<1x8x32xbf16, #tpu.memory_space<vmem>>, vector<1x8x32xbf16>
    %13 = vector.shape_cast %12 : vector<1x8x32xbf16> to vector<8x32xbf16>
    %cst = arith.constant dense<0.000000e+00> : vector<8x8xf32>
    %14 = tpu.matmul %5, %13, %cst {dimension_numbers = #tpu.dot_dimension_numbers<[1], [1], [0], [0], [0, 0, 1, 0], [], []>} : vector<8x32xbf16>, vector<8x32xbf16>, vector<8x8xf32> -> vector<8x8xf32>
    %c0_12 = arith.constant 0 : index
    %c0_13 = arith.constant 0 : index
    %c0_14 = arith.constant 0 : index
    %15 = vector.load %arg6[%c0_12, %c0_13, %c0_14] : memref<1x1x8xf32, #tpu.memory_space<vmem>>, vector<1x1x8xf32>
    %16 = vector.shape_cast %15 : vector<1x1x8xf32> to vector<1x8xf32>
    %17 = vector.broadcast %16 : vector<1x8xf32> to vector<8x8xf32>
    %18 = arith.addf %14, %17 : vector<8x8xf32>
    %c0_15 = arith.constant 0 : index
    %c0_16 = arith.constant 0 : index
    %c0_17 = arith.constant 0 : index
    %19 = vector.load %arg7[%c0_15, %c0_16, %c0_17] : memref<1x8x32xbf16, #tpu.memory_space<vmem>>, vector<1x8x32xbf16>
    %20 = vector.shape_cast %19 : vector<1x8x32xbf16> to vector<8x32xbf16>
    %cst_18 = arith.constant dense<0.000000e+00> : vector<8x8xf32>
    %21 = tpu.matmul %8, %20, %cst_18 {dimension_numbers = #tpu.dot_dimension_numbers<[1], [1], [0], [0], [0, 0, 1, 0], [], []>} : vector<8x32xbf16>, vector<8x32xbf16>, vector<8x8xf32> -> vector<8x8xf32>
    %c0_19 = arith.constant 0 : index
    %c0_20 = arith.constant 0 : index
    %c0_21 = arith.constant 0 : index
    %22 = vector.load %arg8[%c0_19, %c0_20, %c0_21] : memref<1x1x8xf32, #tpu.memory_space<vmem>>, vector<1x1x8xf32>
    %23 = vector.shape_cast %22 : vector<1x1x8xf32> to vector<1x8xf32>
    %24 = vector.broadcast %23 : vector<1x8xf32> to vector<8x8xf32>
    %25 = arith.addf %21, %24 : vector<8x8xf32>
    %c0_22 = arith.constant 0 : index
    %c0_23 = arith.constant 0 : index
    %c0_24 = arith.constant 0 : index
    %26 = vector.load %arg9[%c0_22, %c0_23, %c0_24] : memref<1x8x32xbf16, #tpu.memory_space<vmem>>, vector<1x8x32xbf16>
    %27 = vector.shape_cast %26 : vector<1x8x32xbf16> to vector<8x32xbf16>
    %cst_25 = arith.constant dense<0.000000e+00> : vector<8x8xf32>
    %28 = tpu.matmul %11, %27, %cst_25 {dimension_numbers = #tpu.dot_dimension_numbers<[1], [1], [0], [0], [0, 0, 1, 0], [], []>} : vector<8x32xbf16>, vector<8x32xbf16>, vector<8x8xf32> -> vector<8x8xf32>
    %c0_26 = arith.constant 0 : index
    %c0_27 = arith.constant 0 : index
    %c0_28 = arith.constant 0 : index
    %29 = vector.load %arg10[%c0_26, %c0_27, %c0_28] : memref<1x1x8xf32, #tpu.memory_space<vmem>>, vector<1x1x8xf32>
    %30 = vector.shape_cast %29 : vector<1x1x8xf32> to vector<1x8xf32>
    %31 = vector.broadcast %30 : vector<1x8xf32> to vector<8x8xf32>
    %32 = arith.addf %28, %31 : vector<8x8xf32>
    %33 = arith.truncf %18 : vector<8x8xf32> to vector<8x8xbf16>
    %34 = arith.truncf %25 : vector<8x8xf32> to vector<8x8xbf16>
    %cst_29 = arith.constant dense<0.000000e+00> : vector<8x8xf32>
    %35 = tpu.matmul %33, %34, %cst_29 {dimension_numbers = #tpu.dot_dimension_numbers<[1], [1], [0], [0], [0, 0, 1, 0], [], []>} : vector<8x8xbf16>, vector<8x8xbf16>, vector<8x8xf32> -> vector<8x8xf32>
    %cst_30 = arith.constant 0.353553385 : f32
    %36 = vector.broadcast %cst_30 : f32 to vector<8x8xf32>
    %37 = arith.mulf %35, %36 : vector<8x8xf32>
    %cst_31 = arith.constant dense<0xFF800000> : vector<8xf32>
    %38 = vector.multi_reduction <maximumf>, %37, %cst_31 [1] : vector<8x8xf32> to vector<8xf32>
    %39 = vector.shape_cast %38 : vector<8xf32> to vector<8x1xf32>
    %40 = vector.broadcast %39 : vector<8x1xf32> to vector<8x8xf32>
    %41 = arith.subf %37, %40 : vector<8x8xf32>
    %42 = math.exp %41 : vector<8x8xf32>
    %cst_32 = arith.constant dense<0.000000e+00> : vector<8xf32>
    %43 = vector.multi_reduction <add>, %42, %cst_32 [1] : vector<8x8xf32> to vector<8xf32>
    %44 = vector.shape_cast %43 : vector<8xf32> to vector<8x1xf32>
    %45 = vector.broadcast %44 : vector<8x1xf32> to vector<8x8xf32>
    %46 = arith.divf %42, %45 : vector<8x8xf32>
    %47 = arith.truncf %46 : vector<8x8xf32> to vector<8x8xbf16>
    %48 = arith.truncf %32 : vector<8x8xf32> to vector<8x8xbf16>
    %cst_33 = arith.constant dense<0.000000e+00> : vector<8x8xf32>
    %49 = tpu.matmul %47, %48, %cst_33 {dimension_numbers = #tpu.dot_dimension_numbers<[1], [0], [0], [1], [0, 0, 1, 1], [], []>} : vector<8x8xbf16>, vector<8x8xbf16>, vector<8x8xf32> -> vector<8x8xf32>
    %c0_34 = arith.constant 0 : index
    %c0_35 = arith.constant 0 : index
    %50 = vector.load %arg16[%c0_34, %c0_35] : memref<8x32xf32, #tpu.memory_space<vmem>>, vector<8x32xf32>
    %51 = arith.truncf %49 : vector<8x8xf32> to vector<8x8xbf16>
    %c0_36 = arith.constant 0 : index
    %c0_37 = arith.constant 0 : index
    %c0_38 = arith.constant 0 : index
    %52 = vector.load %arg11[%c0_36, %c0_37, %c0_38] : memref<1x32x8xbf16, #tpu.memory_space<vmem>>, vector<1x32x8xbf16>
    %53 = vector.shape_cast %52 : vector<1x32x8xbf16> to vector<32x8xbf16>
    %cst_39 = arith.constant dense<0.000000e+00> : vector<8x32xf32>
    %54 = tpu.matmul %51, %53, %cst_39 {dimension_numbers = #tpu.dot_dimension_numbers<[1], [1], [0], [0], [0, 0, 1, 0], [], []>} : vector<8x8xbf16>, vector<32x8xbf16>, vector<8x32xf32> -> vector<8x32xf32>
    %55 = arith.addf %50, %54 : vector<8x32xf32>
    %c0_40 = arith.constant 0 : index
    %c0_41 = arith.constant 0 : index
    %56 = vector.load %arg16[%c0_40, %c0_41] : memref<8x32xf32, #tpu.memory_space<vmem>>, vector<8x32xf32>
    tpu.vector_store %arg16[%c0_40, %c0_41], %55 {strides = array<i32>} : memref<8x32xf32, #tpu.memory_space<vmem>>, vector<8x32xf32>,
    %c3_i32 = arith.constant 3 : i32
    %57 = arith.cmpi eq, %arg1, %c3_i32 : i32
    %58 = arith.extui %57 : i1 to i32
    %c0_i32_42 = arith.constant 0 : i32
    %59 = arith.cmpi ne, %58, %c0_i32_42 : i32
    scf.if %59 {
      %c0_43 = arith.constant 0 : index
      %c0_44 = arith.constant 0 : index
      %60 = vector.load %arg16[%c0_43, %c0_44] : memref<8x32xf32, #tpu.memory_space<vmem>>, vector<8x32xf32>
      %c0_45 = arith.constant 0 : index
      %c0_46 = arith.constant 0 : index
      %61 = vector.load %arg12[%c0_45, %c0_46] : memref<1x32xf32, #tpu.memory_space<vmem>>, vector<1x32xf32>
      %62 = vector.broadcast %61 : vector<1x32xf32> to vector<8x32xf32>
      %63 = arith.addf %60, %62 : vector<8x32xf32>
      %64 = arith.addf %63, %4 : vector<8x32xf32>
      %cst_47 = arith.constant dense<0.000000e+00> : vector<8xf32>
      %65 = vector.multi_reduction <add>, %64, %cst_47 [1] : vector<8x32xf32> to vector<8xf32>
      %66 = vector.shape_cast %65 : vector<8xf32> to vector<8x1xf32>
      %cst_48 = arith.constant 3.200000e+01 : f32
      %67 = vector.broadcast %cst_48 : f32 to vector<8x1xf32>
      %68 = arith.divf %66, %67 : vector<8x1xf32>
      %69 = vector.broadcast %68 : vector<8x1xf32> to vector<8x32xf32>
      %70 = arith.subf %64, %69 : vector<8x32xf32>
      %71 = arith.mulf %70, %70 : vector<8x32xf32>
      %cst_49 = arith.constant dense<0.000000e+00> : vector<8xf32>
      %72 = vector.multi_reduction <add>, %71, %cst_49 [1] : vector<8x32xf32> to vector<8xf32>
      %73 = vector.shape_cast %72 : vector<8xf32> to vector<8x1xf32>
      %cst_50 = arith.constant 3.200000e+01 : f32
      %74 = vector.broadcast %cst_50 : f32 to vector<8x1xf32>
      %75 = arith.divf %73, %74 : vector<8x1xf32>
      %76 = vector.broadcast %68 : vector<8x1xf32> to vector<8x32xf32>
      %77 = arith.subf %64, %76 : vector<8x32xf32>
      %cst_51 = arith.constant 9.99999974E-6 : f32
      %78 = vector.broadcast %cst_51 : f32 to vector<8x1xf32>
      %79 = arith.addf %75, %78 : vector<8x1xf32>
      %80 = math.rsqrt %79 : vector<8x1xf32>
      %81 = vector.broadcast %80 : vector<8x1xf32> to vector<8x32xf32>
      %82 = arith.mulf %77, %81 : vector<8x32xf32>
      %c0_52 = arith.constant 0 : index
      %c0_53 = arith.constant 0 : index
      %83 = vector.load %arg13[%c0_52, %c0_53] : memref<1x32xf32, #tpu.memory_space<vmem>>, vector<1x32xf32>
      %84 = vector.broadcast %83 : vector<1x32xf32> to vector<8x32xf32>
      %85 = arith.mulf %82, %84 : vector<8x32xf32>
      %c0_54 = arith.constant 0 : index
      %c0_55 = arith.constant 0 : index
      %86 = vector.load %arg14[%c0_54, %c0_55] : memref<1x32xf32, #tpu.memory_space<vmem>>, vector<1x32xf32>
      %87 = vector.broadcast %86 : vector<1x32xf32> to vector<8x32xf32>
      %88 = arith.addf %85, %87 : vector<8x32xf32>
      %c0_56 = arith.constant 0 : index
      %c0_57 = arith.constant 0 : index
      %c0_58 = arith.constant 0 : index
      %89 = vector.load %arg15[%c0_56, %c0_57, %c0_58] : memref<1x8x32xf32, #tpu.memory_space<vmem>>, vector<1x8x32xf32>
      %90 = vector.shape_cast %89 : vector<1x8x32xf32> to vector<8x32xf32>
      %91 = vector.shape_cast %88 : vector<8x32xf32> to vector<1x8x32xf32>
      tpu.vector_store %arg15[%c0_56, %c0_57, %c0_58], %91 {strides = array<i32>} : memref<1x8x32xf32, #tpu.memory_space<vmem>>, vector<1x8x32xf32>,
    } else {
    }
    return
  }
  func.func @transform_0(%arg0: i32, %arg1: i32) -> (i32, i32, i32) {
    %c0_i32 = arith.constant 0 : i32
    %c0_i32_0 = arith.constant 0 : i32
    %c0_i32_1 = arith.constant 0 : i32
    return %arg0, %c0_i32, %c0_i32_0 : i32, i32, i32
  }
  func.func @transform_1(%arg0: i32, %arg1: i32) -> (i32, i32, i32) {
    %c0_i32 = arith.constant 0 : i32
    %c0_i32_0 = arith.constant 0 : i32
    %c0_i32_1 = arith.constant 0 : i32
    return %arg0, %c0_i32, %c0_i32_0 : i32, i32, i32
  }
  func.func @transform_2(%arg0: i32, %arg1: i32) -> (i32, i32, i32) {
    %c0_i32 = arith.constant 0 : i32
    %c0_i32_0 = arith.constant 0 : i32
    %c0_i32_1 = arith.constant 0 : i32
    return %arg0, %c0_i32, %c0_i32_0 : i32, i32, i32
  }
  func.func @transform_3(%arg0: i32, %arg1: i32) -> (i32, i32, i32) {
    %c0_i32 = arith.constant 0 : i32
    %c0_i32_0 = arith.constant 0 : i32
    %c0_i32_1 = arith.constant 0 : i32
    return %arg1, %c0_i32, %c0_i32_0 : i32, i32, i32
  }
  func.func @transform_4(%arg0: i32, %arg1: i32) -> (i32, i32, i32) {
    %c0_i32 = arith.constant 0 : i32
    %c0_i32_0 = arith.constant 0 : i32
    %c0_i32_1 = arith.constant 0 : i32
    return %arg1, %c0_i32, %c0_i32_0 : i32, i32, i32
  }
  func.func @transform_5(%arg0: i32, %arg1: i32) -> (i32, i32, i32) {
    %c0_i32 = arith.constant 0 : i32
    %c0_i32_0 = arith.constant 0 : i32
    %c0_i32_1 = arith.constant 0 : i32
    return %arg1, %c0_i32, %c0_i32_0 : i32, i32, i32
  }
  func.func @transform_6(%arg0: i32, %arg1: i32) -> (i32, i32, i32) {
    %c0_i32 = arith.constant 0 : i32
    %c0_i32_0 = arith.constant 0 : i32
    %c0_i32_1 = arith.constant 0 : i32
    return %arg1, %c0_i32, %c0_i32_0 : i32, i32, i32
  }
  func.func @transform_7(%arg0: i32, %arg1: i32) -> (i32, i32, i32) {
    %c0_i32 = arith.constant 0 : i32
    %c0_i32_0 = arith.constant 0 : i32
    %c0_i32_1 = arith.constant 0 : i32
    return %arg1, %c0_i32, %c0_i32_0 : i32, i32, i32
  }
  func.func @transform_8(%arg0: i32, %arg1: i32) -> (i32, i32, i32) {
    %c0_i32 = arith.constant 0 : i32
    %c0_i32_0 = arith.constant 0 : i32
    %c0_i32_1 = arith.constant 0 : i32
    return %arg1, %c0_i32, %c0_i32_0 : i32, i32, i32
  }
  func.func @transform_9(%arg0: i32, %arg1: i32) -> (i32, i32, i32) {
    %c0_i32 = arith.constant 0 : i32
    %c0_i32_0 = arith.constant 0 : i32
    %c0_i32_1 = arith.constant 0 : i32
    return %arg1, %c0_i32, %c0_i32_0 : i32, i32, i32
  }
  func.func @transform_10(%arg0: i32, %arg1: i32) -> (i32, i32) {
    %c0_i32 = arith.constant 0 : i32
    %c0_i32_0 = arith.constant 0 : i32
    %c0_i32_1 = arith.constant 0 : i32
    return %c0_i32, %c0_i32_0 : i32, i32
  }
  func.func @transform_11(%arg0: i32, %arg1: i32) -> (i32, i32) {
    %c0_i32 = arith.constant 0 : i32
    %c0_i32_0 = arith.constant 0 : i32
    %c0_i32_1 = arith.constant 0 : i32
    return %c0_i32, %c0_i32_0 : i32, i32
  }
  func.func @transform_12(%arg0: i32, %arg1: i32) -> (i32, i32) {
    %c0_i32 = arith.constant 0 : i32
    %c0_i32_0 = arith.constant 0 : i32
    %c0_i32_1 = arith.constant 0 : i32
    return %c0_i32, %c0_i32_0 : i32, i32
  }
  func.func @transform_13(%arg0: i32, %arg1: i32) -> (i32, i32, i32) {
    %c0_i32 = arith.constant 0 : i32
    %c0_i32_0 = arith.constant 0 : i32
    %c0_i32_1 = arith.constant 0 : i32
    return %arg0, %c0_i32, %c0_i32_0 : i32, i32, i32
  }
}

</mosaic_0001>

<bundles_post_ra>
// kernel: transformer_forward.12
= control target key start
LH: loop header
LB: loop body
LE: loop exit
PB: predicated region body
PF: predicated region fallthrough
CT: control target
= control target key end

     0   :  { %vm65_vm0 = vcmask 261120   ;;  %v302_v0 = vmov 0.0   ;;  %vm303_vm1 = vmmov 0   ;;  %vm146_vm2 = vcmask 523264   ;;  %s400_s1 = inlined_call_operand.vmem [shape: bf16[64,32], index: 1, kind: input, shape index: {}]   ;;  %s401_s3 = inlined_call_operand.vmem [shape: bf16[32,64], index: 3, kind: input, shape index: {}]   ;;  %s402_s0 = inlined_call_operand.vmem [shape: f32[16,32], index: 0, kind: input, shape index: {}]   ;;  %s403_s2 = inlined_call_operand.vmem [shape: f32[1,64], index: 2, kind: input, shape index: {}]   ;;  %s404_s4 = inlined_call_operand.vmem [shape: f32[1,32], index: 4, kind: input, shape index: {}]   ;;  %s405_s5 = inlined_call_operand.vmem [shape: f32[1,32], index: 5, kind: input, shape index: {}]   ;;  %s406_s6 = inlined_call_operand.vmem [shape: f32[1,32], index: 6, kind: input, shape index: {}]   ;;  %s407_s7 = inlined_call_operand.vmem [shape: f32[16,32], index: 7, kind: output, shape index: {}]  }
   0x1   :  { %270 = vmatprep.subr.bf16.mxu0 %v302_v0  ;;  %v292_v1 = vld [vmem:[%s400_s1] sm:$0xff]   ;;  %278 = vmatprep.mubr.msk.bf16.mxu0 %vm303_vm1, %v302_v0  ;;  %v293_v3 = vld [vmem:[%s400_s1 + $0x8] sm:$0xff]   ;;  %v294_v7 = vld [vmem:[%s400_s1 + $0x10] sm:$0xff]  }
   0x2   :  { %282 = vmatprep.subr.bf16.mxu1 %v302_v0  ;;  %286 = vmatprep.mubr.msk.bf16.mxu1 %vm303_vm1, %v302_v0  ;;  %v70_v2 = vsel %vm65_vm0, %v292_v1, 0  ;;  %v296_v4 = vld [vmem:[%s401_s3] sm:$0xff]   ;;  %v73_v6 = vsel %vm65_vm0, %v293_v3, 0  ;;  %v76_v8 = vsel %vm65_vm0, %v294_v7, 0  ;;  %v295_v9 = vld [vmem:[%s400_s1 + $0x18] sm:$0xff]   ;;  %v28_v12 = vld [vmem:[%s402_s0 + $0x8] sm:$0xff] }
   0x3   :  { %271 = vmatpush3.bf16.xpose.msra.mxu0 %v70_v2  ;;  %v151_v5 = vsel %vm146_vm2, %v296_v4, 0  ;;  %v79_v10 = vsel %vm65_vm0, %v295_v9, 0  ;;  %v27_v11 = vld [vmem:[%s402_s0] sm:$0xff]  ;;  %v297_v14 = vld [vmem:[%s401_s3 + $0x8] sm:$0xff]  }
   0x4   :  { %272 = vmatprep.subr.bf16.mxu0 %v302_v0  ;;  %283 = vmatpush3.bf16.xpose.msra.mxu1 %v151_v5  ;;  %v29_v13 = vpack.c.bf16 %v28_v12, %v27_v11  ;;  %v154_v15 = vsel %vm146_vm2, %v297_v14, 0  ;;  %v250_v16 = vld [vmem:[%s403_s2] ss:$0 sm:$0xff] }
   0x5   :  { %284 = vmatprep.subr.bf16.mxu1 %v302_v0  ;;  %v256_v26 = vld [vmem:[%s404_s4] ss:$0 sm:$0xff] }
   0x6   :  { %v260_v54 = vld [vmem:[%s405_s5] ss:$0 sm:$0xff] }
   0x7   :  { %v261_v56 = vld [vmem:[%s406_s6] ss:$0 sm:$0xff] }
   0xb   :  { %273 = vmatpush3.bf16.xpose.msra.mxu0 %v73_v6 }
   0xc   :  { %274 = vmatprep.subr.bf16.mxu0 %v302_v0  ;;  %285 = vmatpush3.bf16.xpose.msra.mxu1 %v154_v15 }
  0x13   :  { %275 = vmatpush3.bf16.xpose.msra.mxu0 %v76_v8 }
  0x14   :  { %276 = vmatprep.subr.bf16.mxu0 %v302_v0 }
  0x1b   :  { %277 = vmatpush3.bf16.xpose.msra.mxu0 %v79_v10 }
  0x22   :  { %279 = vmatmul.mubr.msk.bf16.vlgmr.msra.gmra.mrb[0].mxu0 %vm65_vm0, %v29_v13 }
  0xf5   :  { %v115_v17 = vpop.f32.mrb[0].mxu0 }
  0xf6   :  { %v116_v18 = vadd.f32 %v250_v16, %v115_v17  ;;  %v280_v19 = vpop.f32.mrb[1].mxu0 }
  0xf7   :  { %v118_v20 = vpop.f32.mrb[2].mxu0 }
  0xf8   :  { %v119_v21 = vadd.f32 %v250_v16, %v118_v20  ;;  %v281_v22 = vpop.f32.mrb[3].mxu0  ;;  %v122_v23 = vmax.f32 %v116_v18, 0.0 }
  0xfa   :  { %v123_v24 = vmax.f32 %v119_v21, 0.0 }
  0xfc   :  { %v124_v25 = vpack.c.bf16 %v123_v24, %v122_v23 }
  0xfe   :  { %287 = vmatmul.mubr.msk.bf16.vlgmr.msra.gmra.mrb[0].mxu1 %vm146_vm2, %v124_v25 }
 0x1d1   :  { %v190_v27 = vpop.f32.mrb[0].mxu1 }
 0x1d2   :  { %v191_v28 = vadd.f32 %v256_v26, %v190_v27  ;;  %v288_v29 = vpop.f32.mrb[1].mxu1 }
 0x1d3   :  { %v193_v30 = vpop.f32.mrb[2].mxu1 }
 0x1d4   :  { %v194_v31 = vadd.f32 %v256_v26, %v193_v30  ;;  %v289_v32 = vpop.f32.mrb[3].mxu1  ;;  %v197_v33 = vadd.f32 %v191_v28, %v27_v11 }
 0x1d6   :  { %v199_v34 = vsel %vm65_vm0, %v197_v33, 0.0  ;;  %v198_v35 = vadd.f32 %v194_v31, %v28_v12 }
 0x1d7   :  { %200 = vadd.xlane.f32.xlu0 %v199_v34 }
 0x1d8   :  { %v202_v36 = vsel %vm65_vm0, %v198_v35, 0.0 }
 0x1db   :  { %203 = vadd.xlane.f32.xlu0 %v202_v36 }
 0x264   :  { %v201_v37 = vpop.xlane.xlu0 %200 }
 0x265   :  { %v206_v38 = vmul.f32 0.03125, %v201_v37 }
 0x267   :  { %v208_v39 = vsub.f32 %v197_v33, %v206_v38 }
 0x268   :  { %v204_v40 = vpop.xlane.xlu0 %203 }
 0x269   :  { %v207_v41 = vmul.f32 0.03125, %v204_v40  ;;  %v210_v42 = vmul.f32 %v208_v39, %v208_v39 }
 0x26b   :  { %v209_v43 = vsub.f32 %v198_v35, %v207_v41  ;;  %v212_v44 = vsel %vm65_vm0, %v210_v42, 0.0 }
 0x26c   :  { %213 = vadd.xlane.f32.xlu1 %v212_v44 }
 0x26d   :  { %v211_v45 = vmul.f32 %v209_v43, %v209_v43 }
 0x26f   :  { %v215_v46 = vsel %vm65_vm0, %v211_v45, 0.0 }
 0x270   :  { %216 = vadd.xlane.f32.xlu1 %v215_v46 }
 0x2f9   :  { %v214_v47 = vpop.xlane.xlu1 %213 }
 0x2fa   :  { %v218_v48 = vmul.f32 0.03125, %v214_v47 }
 0x2fc   :  { %v220_v49 = vadd.f32 1e-05, %v218_v48 }
 0x2fd   :  { %v217_v50 = vpop.xlane.xlu1 %216 }
 0x2fe   :  { %298 = vrsqrt.f32 %v220_v49  ;;  %v219_v51 = vmul.f32 0.03125, %v217_v50 }
 0x300   :  { %v221_v52 = vadd.f32 1e-05, %v219_v51 }
 0x302   :  { %300 = vrsqrt.f32 %v221_v52 }
 0x308   :  { %v299_v53 = vpop.eup %298 }
 0x309   :  { %v224_v55 = vmul.f32 %v299_v53, %v208_v39 }
 0x30b   :  { %v233_v57 = vmul.f32 %v260_v54, %v224_v55 }
 0x30c   :  { %v301_v58 = vpop.eup %300 }
 0x30d   :  { %v242_v59 = vadd.f32 %v261_v56, %v233_v57  ;;  %v225_v60 = vmul.f32 %v301_v58, %v209_v43 }
 0x30f   :  { %244 = vst.msk [vmem:[%s407_s7] sm:$0xff] %vm65_vm0, %v242_v59  ;;  %v234_v61 = vmul.f32 %v260_v54, %v225_v60 }
 0x311   :  { %v243_v62 = vadd.f32 %v261_v56, %v234_v61 }
 0x313   :  { %245 = vst.msk [vmem:[%s407_s7 + $0x8] sm:$0xff] %vm65_vm0, %v243_v62 }

// kernel: transformer_forward.21
= control target key start
LH: loop header
LB: loop body
LE: loop exit
PB: predicated region body
PF: predicated region fallthrough
CT: control target
= control target key end

     0   :  { %v185_v1 = vmov 0.0   ;;  %vm40_vm0 = vcmask 261120   ;;  %vm186_vm1 = vmmov 0   ;;  %s246_s0 = inlined_call_operand.vmem [shape: f32[16,32], index: 0, kind: input, shape index: {}]   ;;  %s247_s1 = inlined_call_operand.vmem [shape: bf16[32,32], index: 1, kind: input, shape index: {}]   ;;  %s248_s2 = inlined_call_operand.vmem [shape: f32[1,32], index: 2, kind: input, shape index: {}]   ;;  %s249_s3 = inlined_call_operand.hbm [shape: f32[16,32], index: 3, kind: output, shape index: {}]  }
   0x1   :  { %v151_v0 = vld [vmem:[%s247_s1] sm:$0xff]   ;;  %138 = vmatprep.subr.bf16.mxu0 %v185_v1  ;;  %142 = vmatprep.mubr.msk.bf16.mxu0 %vm186_vm1, %v185_v1 }
   0x2   :  { %v45_v2 = vsel %vm40_vm0, %v151_v0, 0 }
   0x3   :  { %139 = vmatpush3.bf16.xpose.msra.mxu0 %v45_v2 }
   0x4   :  { %8 = vsyncpa [#allocation3], 0  ;;  %140 = vmatprep.subr.bf16.mxu0 %v185_v1  ;;  %v152_v3 = vld [vmem:[%s247_s1 + $0x8] sm:$0xff]   ;;  %v16_v5 = vld [vmem:[%s246_s0] sm:$0xff] }
   0x5   :  { %v48_v4 = vsel %vm40_vm0, %v152_v3, 0  ;;  %v17_v6 = vld [vmem:[%s246_s0 + $0x8] sm:$0xff]  ;;  %v131_v8 = vld [vmem:[%s248_s2] ss:$0 sm:$0xff]  ;;  %s187_s0 = smov [#allocation2]  }
   0x6   :  { %v18_v7 = vpack.c.bf16 %v17_v6, %v16_v5  ;;  %s120_s1 = sshll.u32 %s187_s0, 4  ;;  %s121_s1 = int_to_ptr.vmem [resolvable:$true] %s120_s1 }
   0x7   :  { %s161_s2 = scalar_lea.vmem %s121_s1, 256  ;;  %p166_p1 = scmp.lt.s32.totalorder %s121_s1, %s121_s1 }
   0x8   :  { %p162_p0 = scmp.ne.s32.totalorder %s121_s1, %s161_s2  ;;  %p167_p2 = scmp.lt.s32.totalorder %s161_s2, %s161_s2 }
   0xa   :  { %p168_p3 = por %p167_p2, %p166_p1 }
   0xb   :  { %141 = vmatpush3.bf16.xpose.msra.mxu0 %v48_v4 }
   0xc   :  { %p169_p4 = pnand %p168_p3, %p162_p0 }
  0x12   :  { %143 = vmatmul.mubr.msk.bf16.vlgmr.msra.gmra.mrb[0].mxu0 %vm40_vm0, %v18_v7 }
  0xe5   :  { %v84_v9 = vpop.f32.mrb[0].mxu0 }
  0xe6   :  { %v85_v10 = vadd.f32 %v131_v8, %v84_v9  ;;  %v144_v11 = vpop.f32.mrb[1].mxu0 }
  0xe7   :  { %v87_v12 = vpop.f32.mrb[2].mxu0 }
  0xe8   :  { %v88_v13 = vadd.f32 %v131_v8, %v87_v12  ;;  %v145_v14 = vpop.f32.mrb[3].mxu0  ;;  %v91_v15 = vsel %vm40_vm0, %v85_v10, -inf }
  0xe9   :  { %92 = vmax.xlane.f32.xlu0 %v91_v15 }
  0xea   :  { %v94_v16 = vsel %vm40_vm0, %v88_v13, -inf }
  0xed   :  { %95 = vmax.xlane.f32.xlu0 %v94_v16 }
 0x176   :  { %v93_v17 = vpop.xlane.xlu0 %92 }
 0x177   :  { %v97_v18 = vsub.f32 %v85_v10, %v93_v17 }
 0x179   :  { %v99_v19 = vmul.f32 1.442695, %v97_v18 }
 0x17a   :  { %v96_v20 = vpop.xlane.xlu0 %95 }
 0x17b   :  { %153 = vpow2.f32 %v99_v19  ;;  %v98_v21 = vsub.f32 %v88_v13, %v96_v20 }
 0x17d   :  { %v101_v22 = vmul.f32 1.442695, %v98_v21 }
 0x17f   :  { %155 = vpow2.f32 %v101_v22 }
 0x185   :  { %v154_v23 = vpop.eup %153 }
 0x186   :  { %v103_v24 = vsel %vm40_vm0, %v154_v23, 0.0 }
 0x187   :  { %104 = vadd.xlane.f32.xlu1 %v103_v24 }
 0x189   :  { %v156_v25 = vpop.eup %155 }
 0x18a   :  { %v106_v26 = vsel %vm40_vm0, %v156_v25, 0.0 }
 0x18b   :  { %107 = vadd.xlane.f32.xlu1 %v106_v26 }
 0x214   :  { %v105_v27 = vpop.xlane.xlu1 %104 }
 0x215   :  { %157 = vrcp.f32 %v105_v27 }
 0x218   :  { %v108_v28 = vpop.xlane.xlu1 %107 }
 0x219   :  { %159 = vrcp.f32 %v108_v28 }
 0x21f   :  { %v158_v29 = vpop.eup %157 }
 0x220   :  { %v110_v30 = vmul.f32 %v158_v29, %v154_v23 }
 0x222   :  { %113 = vst.msk [vmem:[#allocation2] sm:$0xff] %vm40_vm0, %v110_v30 }
 0x223   :  { %v160_v31 = vpop.eup %159 }
 0x224   :  { %v112_v32 = vmul.f32 %v160_v31, %v156_v25 }
 0x226   :  { %114 = vst.msk [vmem:[#allocation2 + $0x8] sm:$0xff] %vm40_vm0, %v112_v32 }
 0x227   :  { %172 = shalt.err (!%p169_p4)
}
 0x228   :  { %s173_s24 = scalar_lea.hbm %s249_s3, 256 }
 0x229   :  { %p174_p5 = scmp.ne.s32.totalorder %s249_s3, %s173_s24  ;;  %p177_p6 = scmp.lt.u32.totalorder %s173_s24, %s249_s3 }
 0x22b   :  { %p179_p7 = pnand %p177_p6, %p174_p5 }
 0x22d   :  { %182 = shalt.err (!%p179_p7)
}
 0x22e   :  { %s188_s29 = smov 128   ;;  %s189_s30 = smov 8  }
 0x22f   :  { %126 = dma.vmem_to_hbm [thread:$0]  %s121_s1, 256, %s249_s3, [#allocation3], %s188_s29, %s188_s29, %s189_s30  }
 0x230   :  { %183 = dma.done.wait [#allocation3], 256  }
 0x231   :  { %184 = vsyncadd [#allocation3], 4294967040 }
 0x232   :  { %130 = vsyncpa [#allocation3], 1 }

// kernel: transformer_forward.11
= control target key start
LH: loop header
LB: loop body
LE: loop exit
PB: predicated region body
PF: predicated region fallthrough
CT: control target
= control target key end

     0   :  { %s1404_s25 = smov 0   ;;  %s1406_s26 = smov 0   ;;  %s1591_s0 = inlined_call_operand.vmem [shape: f32[2,8,32], index: 0, kind: input, shape index: {}, may-alias: {0,1,2}]   ;;  %s1592_s1 = inlined_call_operand.vmem [shape: f32[2,8,32], index: 1, kind: input, shape index: {}, may-alias: {0,1,2}]   ;;  %s1593_s2 = inlined_call_operand.vmem [shape: f32[2,8,32], index: 2, kind: input, shape index: {}, may-alias: {0,1,2}]   ;;  %s1594_s3 = inlined_call_operand.vmem [shape: bf16[4,8,32], index: 3, kind: input, shape index: {}]   ;;  %s1595_s4 = inlined_call_operand.vmem [shape: f32[4,1,8], index: 4, kind: input, shape index: {}]   ;;  %s1596_s5 = inlined_call_operand.vmem [shape: bf16[4,8,32], index: 5, kind: input, shape index: {}]   ;;  %s1597_s6 = inlined_call_operand.vmem [shape: f32[4,1,8], index: 6, kind: input, shape index: {}]   ;;  %s1598_s7 = inlined_call_operand.vmem [shape: bf16[4,8,32], index: 7, kind: input, shape index: {}]   ;;  %s1599_s8 = inlined_call_operand.vmem [shape: f32[4,1,8], index: 8, kind: input, shape index: {}]   ;;  %s1600_s9 = inlined_call_operand.vmem [shape: bf16[4,32,8], index: 9, kind: input, shape index: {}]   ;;  %s1601_s10 = inlined_call_operand.vmem [shape: f32[1,32], index: 10, kind: input, shape index: {}]   ;;  %s1602_s11 = inlined_call_operand.vmem [shape: f32[1,32], index: 11, kind: input, shape index: {}]   ;;  %s1603_s12 = inlined_call_operand.vmem [shape: f32[1,32], index: 12, kind: input, shape index: {}]   ;;  %s1604_s13 = inlined_call_operand.vmem [shape: f32[2,8,32], index: 13, kind: output, shape index: {}]  }
   0x1   :  { %1608 = sst [smem:[#allocation8_spill]] %s1591_s0  ;;  %s1408_s27 = smov 0  }
   0x2   :  { %1609 = sst [smem:[#allocation9_spill]] %s1592_s1  ;;  %s1410_s28 = smov 0  }
   0x3   :  { %1610 = sst [smem:[#allocation10_spill]] %s1593_s2  ;;  %s1412_s29 = smov 0  }
   0x4   :  { %1611 = sst [smem:[#allocation11_spill]] %s1594_s3 }
   0x5   :  { %1612 = sst [smem:[#allocation12_spill]] %s1601_s10 }
   0x6   :  { %1613 = sst [smem:[#allocation13_spill]] %s1602_s11 }
   0x7   :  { %1614 = sst [smem:[#allocation14_spill]] %s1603_s12 }
   0x8 LB: > { %1615 = sst [smem:[#allocation3_spill]] %s1321_s27  ;;  %s32_s30 = sadd.s32 1, %s1321_s27  ;;  %s1329_s29 = sphi %s1412_s29, %s23_s29   ;;  %s1325_s28 = sphi %s1410_s28, %s1634_s28   ;;  %s1321_s27 = sphi %s1408_s27, %s1633_s27   ;;  %s1317_s26 = sphi %s1406_s26, %s1632_s26   ;;  %s1313_s25 = sphi %s1404_s25, %s1631_s25  }
   0x9   : > { %1616 = sst [smem:[#allocation4_spill]] %s1325_s28  ;;  %s35_s14 = sadd.s32 1, %s1325_s28 }
   0xa   : > { %1617 = sst [smem:[#allocation5_spill]] %s1329_s29  ;;  %p33_p0 = scmp.ge.s32.totalorder %s32_s30, 4 }
   0xb   : > { %p1160_p1 = scmp.ge.s32.totalorder %s1329_s29, 1  ;;  %p477_p2 = scmp.lt.s32.totalorder %s1329_s29, 9 }
   0xc   : > { %s1636_s30 = smov (%p33_p0, %s32_s30), 0  ;;  %s1638_s14 = smov (!%p33_p0, %s35_s14), %s1325_s28 }
   0xd   : > { %1618 = sst [smem:[#allocation6_spill]] %s1636_s30  ;;  %p478_p3 = pnand %p1160_p1, %p477_p2 }
   0xe   : > { %p37_p4 = scmp.ge.s32.totalorder %s1638_s14, 2  ;;  %p553_p5 = scmp.lt.s32.totalorder (!%p478_p3), %s1317_s26, 1 }
   0xf   : > { %481 = sbr.rel (%p478_p3) target bundleno = 1548 (0x60c), region = 72  ;;  %p565_p6 = scmp.lt.s32.totalorder (!%p478_p3), %s1313_s25, 3 }
  0x10   : > { %s1640_s14 = smov (%p37_p4, %s1638_s14), 0  ;;  %s1620_s0 = sld [smem:[#allocation8_spill]] (!%p478_p3) }
  0x11   : > { %1619 = sst [smem:[#allocation7_spill]] %s1640_s14  ;;  %s1621_s1 = sld [smem:[#allocation9_spill]] (!%p478_p3) }
  0x12   : > { %s1623_s3 = sld [smem:[#allocation11_spill]] (!%p478_p3)  ;;  %p1170_p7 = scmp.ne.s32.totalorder (!%p478_p3), %s1313_s25, 0 }
  0x16   : > { %s1642_s26 = smov (!%p553_p5, %s1317_s26), 1  ;;  %vm600_vm0 = vcmask (!%p1170_p7), 261120   ;;  %v1331_v0 = vmov (!%p1170_p7), 0.0  }
  0x17   : > { %s1438_s15 = scalar_select %p565_p6, %s1313_s25, 3 }
  0x18   : > { %s1440_s16 = sshll.u32 %s1642_s26, 3  ;;  %599 = sbr.rel (%p1170_p7) target bundleno = 31 (0x1f), region = 76  ;;  %601 = vst.msk [vmem:[#allocation2] sm:$0xff] (!%p1170_p7), %vm600_vm0, %v1331_v0 }
  0x19   : > { %s556_s19 = scalar_lea.vmem %s1620_s0, %s1440_s16  ;;  %s560_s22 = scalar_lea.vmem %s1621_s1, %s1440_s16 }
  0x1a   : > { %s1455_s30 = sshll.u32 %s1438_s15, 2  ;;  %s578_s24 = scalar_lea.vmem %s1597_s6, %s1438_s15 }
  0x1b   : > { %s568_s17 = scalar_lea.vmem %s1623_s3, %s1455_s30  ;;  %s575_s21 = scalar_lea.vmem %s1596_s5, %s1455_s30 }
  0x1c   : > { %s582_s11 = scalar_lea.vmem %s1598_s7, %s1455_s30  ;;  %s585_s3 = scalar_lea.vmem %s1599_s8, %s1438_s15 }
  0x1d   : > { %s1188_s10 = sshll.u32 %s1438_s15, 4  ;;  %s594_s18 = scalar_lea.vmem %s1604_s13, %s1440_s16 }
  0x1e   : > { %s1489_s20 = scalar_lea.vmem %s1600_s9, %s1188_s10 }
  0x1f PF: > { %vm616_vm1 = vcmask 261120   ;;  %v663_v1 = vld [vmem:[%s575_s21] sm:$0xf]  ;;  %v1332_v3 = vmov 0.0   ;;  %vm1333_vm2 = vmmov 0   ;;  %vm773_vm3 = vcmask 64512   ;;  %s1624_s12 = scalar_lea.vmem %s1595_s4, %s1438_s15 }
  0x20   : > { %v608_v2 = vld [vmem:[%s568_s17] sm:$0xf]  ;;  %1208 = vmatprep.subr.bf16.mxu1 %v1332_v3  ;;  %v675_v4 = vsel %vm616_vm1, %v663_v1, 0  ;;  %1202 = vmatprep.subr.bf16.mxu0 %v1332_v3  ;;  %s1625_s21 = sld [smem:[#allocation10_spill]]  ;;  %vm837_vm4 = vcmask 1043456   ;;  %v1284_v50 = vld [vmem:[%s1489_s20 + $0x8] sm:$0xff]  }
  0x21   : > { %v621_v5 = vsel %vm616_vm1, %v608_v2, 0  ;;  %v604_v6 = vld [vmem:[%s560_s22] sm:$0xff]  ;;  %1209 = vmatpush3.bf16.xpose.msra.mxu1 %v675_v4  ;;  %1210 = vmatprep.mubr.msk.bf16.mxu1 %vm1333_vm2, %v1332_v3  ;;  %v904_v51 = vsel %vm773_vm3, %v1284_v50, 0  ;;  %p1182_p8 = scmp.ne.s32.totalorder %s1313_s25, 3 }
  0x22   : > { %1203 = vmatpush3.bf16.xpose.msra.mxu0 %v621_v5  ;;  %v1496_v7 = vld [vmem:[%s556_s19] sm:$0xff]  ;;  %1204 = vmatprep.mubr.msk.bf16.mxu0 %vm1333_vm2, %v1332_v3  ;;  %v605_v8 = vpack.c.bf16 %v604_v6, %v604_v6  ;;  %s1628_s26 = sld [smem:[#allocation13_spill]] (!%p1182_p8) }
  0x23   : > { %1220 = vmatprep.subr.bf16.mxu1 %v1332_v3  ;;  %1214 = vmatprep.subr.bf16.mxu0 %v1332_v3  ;;  %v603_v9 = vpack.c.bf16 %v1496_v7, %v1496_v7  ;;  %v1173_v10 = vld [vmem:[%s578_s24] ss:$0 sm:$0xff]  ;;  %s1627_s24 = sld [smem:[#allocation12_spill]] (!%p1182_p8) }
  0x24   : > { %v1171_v17 = vld [vmem:[%s1624_s12] ss:$0 sm:$0xff] }
  0x25   : > { %v717_v25 = vld [vmem:[%s582_s11] sm:$0xf] }
  0x26   : > { %v729_v26 = vsel %vm616_vm1, %v717_v25, 0  ;;  %s1626_s23 = scalar_lea.vmem %s1625_s21, %s1440_s16  ;;  %v1175_v43 = vld [vmem:[%s585_s3] ss:$0 sm:$0xff] }
  0x27   : > { %v606_v27 = vld [vmem:[%s1626_s23] sm:$0xff] }
  0x28   : > { %1211 = vmatmul.mubr.msk.bf16.vlgmr.msra.gmra.mrb[0].mxu1 %vm616_vm1, %v605_v8  ;;  %v607_v28 = vpack.c.bf16 %v606_v27, %v606_v27  ;;  %v1283_v48 = vld [vmem:[%s1489_s20] sm:$0xff]   ;;  %s1629_s20 = sld [smem:[#allocation14_spill]] (!%p1182_p8) }
  0x29   : > { %1205 = vmatmul.mubr.msk.bf16.vlgmr.msra.gmra.mrb[0].mxu0 %vm616_vm1, %v603_v9  ;;  %1222 = vmatprep.mubr.msk.bf16.mxu1 %vm1333_vm2, %v1332_v3  ;;  %v901_v49 = vsel %vm773_vm3, %v1283_v48, 0  ;;  %v881_v61 = vld [vmem:[#allocation2] sm:$0xff] }
  0x2a   : > { %1216 = vmatprep.mubr.msk.bf16.mxu0 %vm1333_vm2, %v1332_v3  ;;  %1215 = vmatpush3.bf16.xpose.msra.mxu0 %v729_v26  ;;  %v1183_v4 = vld [vmem:[%s1627_s24] ss:$0 sm:$0xff] (!%p1182_p8) }
  0x2b   : > { %1226 = vmatprep.subr.bf16.mxu0 %v1332_v3 }
  0x31   : > { %1217 = vmatmul.mubr.msk.bf16.vlgmr.msra.gmra.mrb[4].mxu0 %vm616_vm1, %v607_v28 }
  0x32   : > { %1228 = vmatprep.mubr.msk.bf16.mxu0 %vm1333_vm2, %v1332_v3 }
  0xfb   : > { %v711_v11 = vpop.f32.mrb[0].mxu1 }
  0xfc   : > { %v657_v12 = vpop.f32.mrb[0].mxu0  ;;  %v712_v13 = vadd.f32 %v1173_v10, %v711_v11  ;;  %v1212_v14 = vpop.f32.mrb[1].mxu1 }
  0xfd   : > { %v1206_v15 = vpop.f32.mrb[1].mxu0  ;;  %v714_v16 = vpop.f32.mrb[2].mxu1  ;;  %v658_v23 = vadd.f32 %v1171_v17, %v657_v12 }
  0xfe   : > { %v660_v18 = vpop.f32.mrb[2].mxu0  ;;  %v772_v19 = vpack.c.bf16 %v712_v13, %v712_v13  ;;  %v1213_v20 = vpop.f32.mrb[3].mxu1 }
  0xff   : > { %v1207_v21 = vpop.f32.mrb[3].mxu0  ;;  %v771_v24 = vpack.c.bf16 %v658_v23, %v658_v23 }
 0x100   : > { %v778_v22 = vsel %vm773_vm3, %v772_v19, 0  ;;  %v1185_v19 = vld [vmem:[%s1629_s20] ss:$0 sm:$0xff] (!%p1182_p8) }
 0x101   : > { %1221 = vmatpush3.bf16.xpose.msra.mxu1 %v778_v22 }
 0x102   : > { %1232 = vmatprep.subr.bf16.mxu1 %v1332_v3 }
 0x104   : > { %v765_v40 = vpop.f32.mrb[4].mxu0 }
 0x105   : > { %v1218_v41 = vpop.f32.mrb[5].mxu0  ;;  %v766_v45 = vadd.f32 %v1175_v43, %v765_v40 }
 0x106   : > { %v768_v42 = vpop.f32.mrb[6].mxu0 }
 0x107   : > { %v1219_v44 = vpop.f32.mrb[7].mxu0  ;;  %v833_v46 = vpack.c.bf16 %v766_v45, %v766_v45 }
 0x108   : > { %1223 = vmatmul.mubr.msk.bf16.vlgmr.msra.gmra.mrb[4].mxu1 %vm773_vm3, %v771_v24 }
 0x109   : > { %1236 = vmatprep.mubr.msk.bf16.mxu1 %vm1333_vm2, %v1332_v3  ;;  %v839_v47 = vsel %vm837_vm4, %v833_v46, 0  ;;  %1233 = vmatpush3.bf16.xpose.msra.mxu1 %v901_v49 }
 0x10a   : > { %1227 = vmatpush3.bf16.msra.mxu0 %v839_v47  ;;  %1234 = vmatprep.subr.bf16.mxu1 %v1332_v3 }
 0x111   : > { %1235 = vmatpush3.bf16.xpose.msra.mxu1 %v904_v51 }
 0x1db   : > { %v814_v29 = vpop.f32.mrb[4].mxu1 }
 0x1dc   : > { %v820_v30 = vmul.f32 0.35355338, %v814_v29  ;;  %v1224_v31 = vpop.f32.mrb[5].mxu1 }
 0x1dd   : > { %v817_v32 = vpop.f32.mrb[6].mxu1 }
 0x1de   : > { %v1225_v33 = vpop.f32.mrb[7].mxu1  ;;  %v821_v34 = vsel %vm773_vm3, %v820_v30, -inf }
 0x1df   : > { %822 = vmax.xlane.f32.xlu0 %v821_v34 }
 0x26c   : > { %v823_v35 = vpop.xlane.xlu0 %822 }
 0x26d   : > { %v824_v36 = vsub.f32 %v820_v30, %v823_v35 }
 0x26f   : > { %v825_v37 = vmul.f32 1.442695, %v824_v36 }
 0x271   : > { %1285 = vpow2.f32 %v825_v37 }
 0x27b   : > { %v1286_v38 = vpop.eup %1285 }
 0x27c   : > { %v827_v39 = vsel %vm773_vm3, %v1286_v38, 0.0 }
 0x27d   : > { %828 = vadd.xlane.f32.xlu0 %v827_v39 }
 0x30a   : > { %v829_v52 = vpop.xlane.xlu0 %828 }
 0x30b   : > { %1287 = vrcp.f32 %v829_v52 }
 0x315   : > { %v1288_v53 = vpop.eup %1287 }
 0x316   : > { %v831_v54 = vmul.f32 %v1288_v53, %v1286_v38 }
 0x318   : > { %v832_v55 = vpack.c.bf16 %v831_v54, %v831_v54 }
 0x31a   : > { %1229 = vmatmul.mubr.msk.bf16.vlgmr.msra.gmra.mrb[8].mxu0 %vm773_vm3, %v832_v55 }
 0x3ed   : > { %v875_v56 = vpop.f32.mrb[8].mxu0 }
 0x3ee   : > { %v882_v57 = vpack.c.bf16 %v875_v56, %v875_v56  ;;  %v1230_v58 = vpop.f32.mrb[9].mxu0 }
 0x3ef   : > { %v878_v59 = vpop.f32.mrb[10].mxu0 }
 0x3f0   : > { %v1231_v60 = vpop.f32.mrb[11].mxu0  ;;  %1237 = vmatmul.mubr.msk.bf16.vlgmr.msra.gmra.mrb[8].mxu1 %vm773_vm3, %v882_v57 }
 0x4c0   : > { %951 = sbr.rel (%p1182_p8) target bundleno = 1548 (0x60c), region = 80 }
 0x4c3   : > { %v940_v62 = vpop.f32.mrb[8].mxu1 }
 0x4c4   : > { %v946_v63 = vadd.f32 %v940_v62, %v881_v61  ;;  %v1238_v0 = vpop.f32.mrb[9].mxu1 }
 0x4c5   : > { %v943_v1 = vpop.f32.mrb[10].mxu1 }
 0x4c6   : > { %947 = vst.msk [vmem:[#allocation2] sm:$0xff] %vm616_vm1, %v946_v63  ;;  %v1239_v2 = vpop.f32.mrb[11].mxu1 }
 0x4cd   : > { %v952_v3 = vld [vmem:[#allocation2] sm:$0xff] }
 0x4ce   : > { %v960_v5 = vadd.f32 %v1183_v4, %v952_v3 }
 0x4d0   : > { %v961_v6 = vadd.f32 %v960_v5, %v1496_v7  ;;  %v1184_v7 = vld [vmem:[%s1628_s26] ss:$0 sm:$0xff] }
 0x4d2   : > { %v962_v8 = vsel %vm616_vm1, %v961_v6, 0.0 }
 0x4d3   : > { %963 = vadd.xlane.f32.xlu0 %v962_v8 }
 0x560   : > { %v964_v9 = vpop.xlane.xlu0 %963 }
 0x561   : > { %v966_v10 = vmul.f32 0.03125, %v964_v9 }
 0x563   : > { %v967_v11 = vsub.f32 %v961_v6, %v966_v10 }
 0x565   : > { %v968_v12 = vmul.f32 %v967_v11, %v967_v11 }
 0x567   : > { %v969_v13 = vsel %vm616_vm1, %v968_v12, 0.0 }
 0x568   : > { %970 = vadd.xlane.f32.xlu0 %v969_v13 }
 0x5f5   : > { %v971_v14 = vpop.xlane.xlu0 %970 }
 0x5f6   : > { %v972_v15 = vmul.f32 0.03125, %v971_v14 }
 0x5f8   : > { %v973_v16 = vadd.f32 1e-05, %v972_v15 }
 0x5fa   : > { %1289 = vrsqrt.f32 %v973_v16 }
 0x604   : > { %v1290_v17 = vpop.eup %1289 }
 0x605   : > { %v975_v18 = vmul.f32 %v1290_v17, %v967_v11 }
 0x607   : > { %v983_v20 = vmul.f32 %v1184_v7, %v975_v18 }
 0x609   : > { %v991_v21 = vadd.f32 %v1185_v19, %v983_v20 }
 0x60b   : > { %992 = vst.msk [vmem:[%s594_s18] sm:$0xff] %vm616_vm1, %v991_v21 }
 0x60c PF: > { %s1630_s2 = sld [smem:[#allocation5_spill]]  ;;  %s1631_s25 = sld [smem:[#allocation3_spill]] }
 0x60d   : > { %s1632_s26 = sld [smem:[#allocation4_spill]]  ;;  %s1633_s27 = sld [smem:[#allocation6_spill]] }
 0x60e   : > { %s1634_s28 = sld [smem:[#allocation7_spill]] }
 0x612   : > { %s23_s29 = sadd.s32 1, %s1630_s2  }
 0x613   : > { %p20_p9 = scmp.ge.s32.totalorder %s23_s29, 10  }
 0x615   :  { %22 = sbr.rel (!%p20_p9) target bundleno = 8 (0x8), region = 137 }

</bundles_post_ra>
